<compile_context>
chip_gen: v5e
topology: v5e:2x2
jax: 0.10.0
libtpu: 0.0.40
codegen_flags: <defaults>
</compile_context>

<pallas_src>
import numpy as np
import jax
import jax.numpy as jnp
from jax.experimental import pallas as pl
from jax.experimental.pallas import tpu as pltpu

# ---- config mirroring se_params -------------------------------------------
L = 32                     # se_params['l']
POST = 2                   # se_params['post']
LINS = [16, 16, 16]        # se_params['lins']
COARSEN_THRESHOLD = 2      # se_params['coarsening_threshold']
N_NODES = 8                # example graph size
LANES = 128                # lane width of the packed parameter slab
# activation = 'tanh'  ->  jnp.tanh inside the kernel


# ------------------------- host preprocessing (one time) --------------------
def build_mean_adj(edge_index, n):
    # A[i, j] = 1/deg_in(i) for edge j -> i  (PyG SAGEConv 'mean' aggregation)
    a = np.zeros((n, n), np.float32)
    src, dst = edge_index
    a[dst, src] = 1.0
    deg = np.maximum(a.sum(axis=1, keepdims=True), 1.0)
    return (a / deg).astype(np.float32)


def coarsen_once(edge_index, n):
    # deterministic consecutive pairing (stand-in for graclus matching)
    cluster = np.arange(n) // 2
    n_c = int(cluster.max()) + 1
    src, dst = edge_index
    cs, cd = cluster[src], cluster[dst]
    keep = cs != cd                       # avg_pool/pool_edge drops self loops
    e = np.unique(np.stack([cs[keep], cd[keep]], axis=0), axis=1)
    return cluster, e, n_c


def preprocess_graph(edge_index, n):
    """Per-level (U, A, A@U) fine->coarse, plus the coarse adjacency."""
    e = np.asarray(edge_index)
    levels = []                           # coarsening order (fine -> coarse)
    while n > COARSEN_THRESHOLD:
        cluster, e_c, n_c = coarsen_once(e, n)
        _, inverse = np.unique(cluster, return_inverse=True)
        u = np.zeros((n, n_c), np.float32)
        u[np.arange(n), inverse] = 1.0    # x_fine = U @ x_coarse  == x[inverse]
        a = build_mean_adj(e, n)
        au = (a @ u).astype(np.float32)   # host-fold: agg0 = A @ (U @ xc) = AU @ xc
        levels.append((u, a, au))
        e, n = e_c, n_c
    # Original module hard-codes x = eye(2) on the coarse graph.
    assert n == 2, "coarsening must terminate at exactly 2 nodes (x = eye(2))"
    a_coarse = build_mean_adj(e, n)
    levels.reverse()                      # unpool order: coarsest level first
    return a_coarse, levels


# ----------------------- one-time parameter slab packing --------------------
def pack_slab(a_coarse, levels, params):
    """Pack all static graph matrices + params into one [rows, 128] f32 slab."""
    entries = [('a_coarse', a_coarse)]
    for li, (u, a, au) in enumerate(levels):
        entries += [(f'U{li}', u), (f'A{li}', a), (f'AU{li}', au)]
    entries += [('wl_c', params['conv_coarse']['wl']),
                ('wr_c', params['conv_coarse']['wr']),
                ('b_c', params['conv_coarse']['b'])]
    for i in range(POST):
        entries += [(f'wl_p{i}', params['conv_post'][i]['wl']),
                    (f'wr_p{i}', params['conv_post'][i]['wr']),
                    (f'b_p{i}', params['conv_post'][i]['b'])]
    for name in ('lins1', 'lins2', 'lins3', 'final'):
        entries += [(f'{name}_w', params[name]['w']),
                    (f'{name}_b', params[name]['b'])]

    offsets, blocks, row = {}, [], 0
    for name, arr in entries:
        arr = jnp.asarray(arr, jnp.float32)
        r, c = arr.shape
        assert c <= LANES, (name, arr.shape)
        rp = ((r + 7) // 8) * 8           # sublane-align every block
        blk = jnp.zeros((rp, LANES), jnp.float32).at[:r, :c].set(arr)
        offsets[name] = (row, r, c)
        blocks.append(blk)
        row += rp
    slab = jnp.concatenate(blocks, axis=0)        # one-time, not on hot path
    return slab, offsets, row


# --------------------------- fused Pallas forward ---------------------------
def make_forward(offsets, n_levels, n_nodes):

    def kernel(slab_ref, q_ref):
        def get(name):
            r0, r, c = offsets[name]
            return slab_ref[r0:r0 + r, 0:c]          # static, sublane-aligned

        def vpu_mm(a, b):
            # small-K matmul on the VPU: sum_k a[:, k:k+1] * b[k:k+1, :]
            out = a[:, 0:1] * b[0:1, :]
            for k in range(1, a.shape[1]):
                out = out + a[:, k:k + 1] * b[k:k + 1, :]
            return out

        def mxu(a, b):
            return jnp.dot(a, b, preferred_element_type=jnp.float32)

        # coarse SAGEConv on x = eye(2):  agg = A_c, x @ Wr = Wr
        #   y = tanh(A_c @ Wl + Wr + b)      (K=2 -> VPU broadcast-mul-add)
        x = jnp.tanh(vpu_mm(get('a_coarse'), get('wl_c'))
                     + get('wr_c') + get('b_c'))

        # unpool + POST convs per level, coarsest -> finest (statically unrolled)
        for li in range(n_levels):
            u, a, au = get(f'U{li}'), get(f'A{li}'), get(f'AU{li}')
            agg = vpu_mm(au, x)          # A @ (U @ x), off the coarse activation
            xf = vpu_mm(u, x)            # unpool (row duplication)
            # first post conv (conv_post[0])
            x = jnp.tanh(mxu(agg, get('wl_p0')) + mxu(xf, get('wr_p0'))
                         + get('b_p0'))
            # remaining post convs
            for i in range(1, POST):
                agg = vpu_mm(a, x)       # K<=8 aggregation stays on the VPU
                x = jnp.tanh(mxu(agg, get(f'wl_p{i}')) + mxu(x, get(f'wr_p{i}'))
                             + get(f'b_p{i}'))

        # MLP head (K>=16 -> MXU)
        x = jnp.tanh(mxu(x, get('lins1_w')) + get('lins1_b'))
        x = jnp.tanh(mxu(x, get('lins2_w')) + get('lins2_b'))
        x = jnp.tanh(mxu(x, get('lins3_w')) + get('lins3_b'))
        x = mxu(x, get('final_w')) + get('final_b')

        # reduced QR of [N, 2] via modified Gram-Schmidt (eps-guarded, EUP rsqrt)
        c0 = x[:, 0:1]
        c1 = x[:, 1:2]
        eps = jnp.float32(1e-12)
        q0 = c0 * jax.lax.rsqrt(jnp.sum(c0 * c0, keepdims=True) + eps)
        r01 = jnp.sum(q0 * c1, keepdims=True)
        v1 = c1 - r01 * q0
        q1 = v1 * jax.lax.rsqrt(jnp.sum(v1 * v1, keepdims=True) + eps)
        col = jax.lax.broadcasted_iota(jnp.int32, (n_nodes, 2), 1)
        q_ref[...] = jnp.where(col == 0, q0, q1)

    vmem_spec = pl.BlockSpec(memory_space=pltpu.MemorySpace.VMEM)

    @jax.jit
    def forward(slab):
        return pl.pallas_call(
            kernel,
            out_shape=jax.ShapeDtypeStruct((n_nodes, 2), jnp.float32),
            in_specs=[vmem_spec],        # ONE lane-dense slab -> one DMA
            out_specs=vmem_spec,
        )(slab)

    return forward


# ------------------------------- params --------------------------------------
def init_params(key):
    keys = jax.random.split(key, 32)
    ki = iter(keys)

    def lin(fin, fout, bias=True):
        w = jax.random.normal(next(ki), (fin, fout), jnp.float32) / np.sqrt(fin)
        if bias:
            b = jax.random.normal(next(ki), (1, fout), jnp.float32) * 0.01
        else:
            b = jnp.zeros((1, fout), jnp.float32)
        return w, b

    params = {}
    wl, b = lin(2, L)
    wr, _ = lin(2, L, bias=False)
    params['conv_coarse'] = {'wl': wl, 'wr': wr, 'b': b}
    params['conv_post'] = []
    for _ in range(POST):
        wl, b = lin(L, L)
        wr, _ = lin(L, L, bias=False)
        params['conv_post'].append({'wl': wl, 'wr': wr, 'b': b})
    w, b = lin(L, LINS[0]); params['lins1'] = {'w': w, 'b': b}
    w, b = lin(LINS[0], LINS[1]); params['lins2'] = {'w': w, 'b': b}
    w, b = lin(LINS[1], LINS[2]); params['lins3'] = {'w': w, 'b': b}
    w, b = lin(LINS[2], 2); params['final'] = {'w': w, 'b': b}
    return params


if __name__ == "__main__":
    key = jax.random.PRNGKey(0)
    kx, kp = jax.random.split(key)

    # example graph: bidirected ring on 8 nodes
    n = N_NODES
    src = np.arange(n)
    dst = (src + 1) % n
    edge_index = np.concatenate(
        [np.stack([src, dst]), np.stack([dst, src])], axis=1)     # [2, 16]
    x_in = jax.random.normal(kx, (n, 2), jnp.float32)             # graph.x
    # (graph.x only determines the node count; the model replaces it by eye(2))

    params = init_params(kp)
    a_coarse, levels = preprocess_graph(edge_index, x_in.shape[0])

    # one-time packing of all params + graph matrices into a single VMEM slab
    slab, offsets, slab_rows = pack_slab(a_coarse, levels, params)
    forward = make_forward(offsets, len(levels), n)

    q = jax.block_until_ready(forward(slab))
    assert q.shape == (n, 2) and q.dtype == jnp.float32
    # sanity: columns ~orthonormal
    g = np.asarray(q).T @ np.asarray(q)
    assert np.allclose(g, np.eye(2), atol=1e-3), g
    print("KERNEL_OK")
</pallas_src>

<mosaic_0001>
module attributes {stable_mosaic.version = 11 : i64} {
  func.func @kernel(%arg0: memref<336x128xf32, #tpu.memory_space<vmem>>, %arg1: memref<8x2xf32, #tpu.memory_space<vmem>>) attributes {dimension_semantics = [], scalar_prefetch = 0 : i64, scratch_operands = 0 : i64, tpu.core_type = #tpu.core_type<tc>} {
    %c0 = arith.constant 0 : index
    %c0_0 = arith.constant 0 : index
    %0 = vector.load %arg0[%c0, %c0_0] : memref<336x128xf32, #tpu.memory_space<vmem>>, vector<2x2xf32>
    %c56 = arith.constant 56 : index
    %c0_1 = arith.constant 0 : index
    %1 = vector.load %arg0[%c56, %c0_1] : memref<336x128xf32, #tpu.memory_space<vmem>>, vector<2x32xf32>
    %2 = vector.extract_strided_slice %0 {offsets = [0, 0], sizes = [2, 1], strides = [1, 1]} : vector<2x2xf32> to vector<2x1xf32>
    %3 = vector.extract_strided_slice %1 {offsets = [0, 0], sizes = [1, 32], strides = [1, 1]} : vector<2x32xf32> to vector<1x32xf32>
    %4 = vector.broadcast %2 : vector<2x1xf32> to vector<2x32xf32>
    %5 = vector.broadcast %3 : vector<1x32xf32> to vector<2x32xf32>
    %6 = arith.mulf %4, %5 : vector<2x32xf32>
    %7 = vector.extract_strided_slice %0 {offsets = [0, 1], sizes = [2, 1], strides = [1, 1]} : vector<2x2xf32> to vector<2x1xf32>
    %8 = vector.extract_strided_slice %1 {offsets = [1, 0], sizes = [1, 32], strides = [1, 1]} : vector<2x32xf32> to vector<1x32xf32>
    %9 = vector.broadcast %7 : vector<2x1xf32> to vector<2x32xf32>
    %10 = vector.broadcast %8 : vector<1x32xf32> to vector<2x32xf32>
    %11 = arith.mulf %9, %10 : vector<2x32xf32>
    %12 = arith.addf %6, %11 : vector<2x32xf32>
    %c64 = arith.constant 64 : index
    %c0_2 = arith.constant 0 : index
    %13 = vector.load %arg0[%c64, %c0_2] : memref<336x128xf32, #tpu.memory_space<vmem>>, vector<2x32xf32>
    %14 = arith.addf %12, %13 : vector<2x32xf32>
    %c72 = arith.constant 72 : index
    %c0_3 = arith.constant 0 : index
    %15 = vector.load %arg0[%c72, %c0_3] : memref<336x128xf32, #tpu.memory_space<vmem>>, vector<1x32xf32>
    %16 = vector.broadcast %15 : vector<1x32xf32> to vector<2x32xf32>
    %17 = arith.addf %14, %16 : vector<2x32xf32>
    %18 = math.tanh %17 : vector<2x32xf32>
    %c8 = arith.constant 8 : index
    %c0_4 = arith.constant 0 : index
    %19 = vector.load %arg0[%c8, %c0_4] : memref<336x128xf32, #tpu.memory_space<vmem>>, vector<4x2xf32>
    %c16 = arith.constant 16 : index
    %c0_5 = arith.constant 0 : index
    %20 = vector.load %arg0[%c16, %c0_5] : memref<336x128xf32, #tpu.memory_space<vmem>>, vector<4x4xf32>
    %c24 = arith.constant 24 : index
    %c0_6 = arith.constant 0 : index
    %21 = vector.load %arg0[%c24, %c0_6] : memref<336x128xf32, #tpu.memory_space<vmem>>, vector<4x2xf32>
    %22 = vector.extract_strided_slice %21 {offsets = [0, 0], sizes = [4, 1], strides = [1, 1]} : vector<4x2xf32> to vector<4x1xf32>
    %23 = vector.extract_strided_slice %18 {offsets = [0, 0], sizes = [1, 32], strides = [1, 1]} : vector<2x32xf32> to vector<1x32xf32>
    %24 = vector.broadcast %22 : vector<4x1xf32> to vector<4x32xf32>
    %25 = vector.broadcast %23 : vector<1x32xf32> to vector<4x32xf32>
    %26 = arith.mulf %24, %25 : vector<4x32xf32>
    %27 = vector.extract_strided_slice %21 {offsets = [0, 1], sizes = [4, 1], strides = [1, 1]} : vector<4x2xf32> to vector<4x1xf32>
    %28 = vector.extract_strided_slice %18 {offsets = [1, 0], sizes = [1, 32], strides = [1, 1]} : vector<2x32xf32> to vector<1x32xf32>
    %29 = vector.broadcast %27 : vector<4x1xf32> to vector<4x32xf32>
    %30 = vector.broadcast %28 : vector<1x32xf32> to vector<4x32xf32>
    %31 = arith.mulf %29, %30 : vector<4x32xf32>
    %32 = arith.addf %26, %31 : vector<4x32xf32>
    %33 = vector.extract_strided_slice %19 {offsets = [0, 0], sizes = [4, 1], strides = [1, 1]} : vector<4x2xf32> to vector<4x1xf32>
    %34 = vector.extract_strided_slice %18 {offsets = [0, 0], sizes = [1, 32], strides = [1, 1]} : vector<2x32xf32> to vector<1x32xf32>
    %35 = vector.broadcast %33 : vector<4x1xf32> to vector<4x32xf32>
    %36 = vector.broadcast %34 : vector<1x32xf32> to vector<4x32xf32>
    %37 = arith.mulf %35, %36 : vector<4x32xf32>
    %38 = vector.extract_strided_slice %19 {offsets = [0, 1], sizes = [4, 1], strides = [1, 1]} : vector<4x2xf32> to vector<4x1xf32>
    %39 = vector.extract_strided_slice %18 {offsets = [1, 0], sizes = [1, 32], strides = [1, 1]} : vector<2x32xf32> to vector<1x32xf32>
    %40 = vector.broadcast %38 : vector<4x1xf32> to vector<4x32xf32>
    %41 = vector.broadcast %39 : vector<1x32xf32> to vector<4x32xf32>
    %42 = arith.mulf %40, %41 : vector<4x32xf32>
    %43 = arith.addf %37, %42 : vector<4x32xf32>
    %c80 = arith.constant 80 : index
    %c0_7 = arith.constant 0 : index
    %44 = vector.load %arg0[%c80, %c0_7] : memref<336x128xf32, #tpu.memory_space<vmem>>, vector<32x32xf32>
    %cst = arith.constant dense<0.000000e+00> : vector<4x32xf32>
    %45 = tpu.matmul %32, %44, %cst {dimension_numbers = #tpu.dot_dimension_numbers<[1], [0], [0], [1], [0, 0, 1, 1], [], []>} : vector<4x32xf32>, vector<32x32xf32>, vector<4x32xf32> -> vector<4x32xf32>
    %c112 = arith.constant 112 : index
    %c0_8 = arith.constant 0 : index
    %46 = vector.load %arg0[%c112, %c0_8] : memref<336x128xf32, #tpu.memory_space<vmem>>, vector<32x32xf32>
    %cst_9 = arith.constant dense<0.000000e+00> : vector<4x32xf32>
    %47 = tpu.matmul %43, %46, %cst_9 {dimension_numbers = #tpu.dot_dimension_numbers<[1], [0], [0], [1], [0, 0, 1, 1], [], []>} : vector<4x32xf32>, vector<32x32xf32>, vector<4x32xf32> -> vector<4x32xf32>
    %48 = arith.addf %45, %47 : vector<4x32xf32>
    %c144 = arith.constant 144 : index
    %c0_10 = arith.constant 0 : index
    %49 = vector.load %arg0[%c144, %c0_10] : memref<336x128xf32, #tpu.memory_space<vmem>>, vector<1x32xf32>
    %50 = vector.broadcast %49 : vector<1x32xf32> to vector<4x32xf32>
    %51 = arith.addf %48, %50 : vector<4x32xf32>
    %52 = math.tanh %51 : vector<4x32xf32>
    %53 = vector.extract_strided_slice %20 {offsets = [0, 0], sizes = [4, 1], strides = [1, 1]} : vector<4x4xf32> to vector<4x1xf32>
    %54 = vector.extract_strided_slice %52 {offsets = [0, 0], sizes = [1, 32], strides = [1, 1]} : vector<4x32xf32> to vector<1x32xf32>
    %55 = vector.broadcast %53 : vector<4x1xf32> to vector<4x32xf32>
    %56 = vector.broadcast %54 : vector<1x32xf32> to vector<4x32xf32>
    %57 = arith.mulf %55, %56 : vector<4x32xf32>
    %58 = vector.extract_strided_slice %20 {offsets = [0, 1], sizes = [4, 1], strides = [1, 1]} : vector<4x4xf32> to vector<4x1xf32>
    %59 = vector.extract_strided_slice %52 {offsets = [1, 0], sizes = [1, 32], strides = [1, 1]} : vector<4x32xf32> to vector<1x32xf32>
    %60 = vector.broadcast %58 : vector<4x1xf32> to vector<4x32xf32>
    %61 = vector.broadcast %59 : vector<1x32xf32> to vector<4x32xf32>
    %62 = arith.mulf %60, %61 : vector<4x32xf32>
    %63 = arith.addf %57, %62 : vector<4x32xf32>
    %64 = vector.extract_strided_slice %20 {offsets = [0, 2], sizes = [4, 1], strides = [1, 1]} : vector<4x4xf32> to vector<4x1xf32>
    %65 = vector.extract_strided_slice %52 {offsets = [2, 0], sizes = [1, 32], strides = [1, 1]} : vector<4x32xf32> to vector<1x32xf32>
    %66 = vector.broadcast %64 : vector<4x1xf32> to vector<4x32xf32>
    %67 = vector.broadcast %65 : vector<1x32xf32> to vector<4x32xf32>
    %68 = arith.mulf %66, %67 : vector<4x32xf32>
    %69 = arith.addf %63, %68 : vector<4x32xf32>
    %70 = vector.extract_strided_slice %20 {offsets = [0, 3], sizes = [4, 1], strides = [1, 1]} : vector<4x4xf32> to vector<4x1xf32>
    %71 = vector.extract_strided_slice %52 {offsets = [3, 0], sizes = [1, 32], strides = [1, 1]} : vector<4x32xf32> to vector<1x32xf32>
    %72 = vector.broadcast %70 : vector<4x1xf32> to vector<4x32xf32>
    %73 = vector.broadcast %71 : vector<1x32xf32> to vector<4x32xf32>
    %74 = arith.mulf %72, %73 : vector<4x32xf32>
    %75 = arith.addf %69, %74 : vector<4x32xf32>
    %c152 = arith.constant 152 : index
    %c0_11 = arith.constant 0 : index
    %76 = vector.load %arg0[%c152, %c0_11] : memref<336x128xf32, #tpu.memory_space<vmem>>, vector<32x32xf32>
    %cst_12 = arith.constant dense<0.000000e+00> : vector<4x32xf32>
    %77 = tpu.matmul %75, %76, %cst_12 {dimension_numbers = #tpu.dot_dimension_numbers<[1], [0], [0], [1], [0, 0, 1, 1], [], []>} : vector<4x32xf32>, vector<32x32xf32>, vector<4x32xf32> -> vector<4x32xf32>
    %c184 = arith.constant 184 : index
    %c0_13 = arith.constant 0 : index
    %78 = vector.load %arg0[%c184, %c0_13] : memref<336x128xf32, #tpu.memory_space<vmem>>, vector<32x32xf32>
    %cst_14 = arith.constant dense<0.000000e+00> : vector<4x32xf32>
    %79 = tpu.matmul %52, %78, %cst_14 {dimension_numbers = #tpu.dot_dimension_numbers<[1], [0], [0], [1], [0, 0, 1, 1], [], []>} : vector<4x32xf32>, vector<32x32xf32>, vector<4x32xf32> -> vector<4x32xf32>
    %80 = arith.addf %77, %79 : vector<4x32xf32>
    %c216 = arith.constant 216 : index
    %c0_15 = arith.constant 0 : index
    %81 = vector.load %arg0[%c216, %c0_15] : memref<336x128xf32, #tpu.memory_space<vmem>>, vector<1x32xf32>
    %82 = vector.broadcast %81 : vector<1x32xf32> to vector<4x32xf32>
    %83 = arith.addf %80, %82 : vector<4x32xf32>
    %84 = math.tanh %83 : vector<4x32xf32>
    %c32 = arith.constant 32 : index
    %c0_16 = arith.constant 0 : index
    %85 = vector.load %arg0[%c32, %c0_16] : memref<336x128xf32, #tpu.memory_space<vmem>>, vector<8x4xf32>
    %c40 = arith.constant 40 : index
    %c0_17 = arith.constant 0 : index
    %86 = vector.load %arg0[%c40, %c0_17] : memref<336x128xf32, #tpu.memory_space<vmem>>, vector<8x8xf32>
    %c48 = arith.constant 48 : index
    %c0_18 = arith.constant 0 : index
    %87 = vector.load %arg0[%c48, %c0_18] : memref<336x128xf32, #tpu.memory_space<vmem>>, vector<8x4xf32>
    %88 = vector.extract_strided_slice %87 {offsets = [0, 0], sizes = [8, 1], strides = [1, 1]} : vector<8x4xf32> to vector<8x1xf32>
    %89 = vector.extract_strided_slice %84 {offsets = [0, 0], sizes = [1, 32], strides = [1, 1]} : vector<4x32xf32> to vector<1x32xf32>
    %90 = vector.broadcast %88 : vector<8x1xf32> to vector<8x32xf32>
    %91 = vector.broadcast %89 : vector<1x32xf32> to vector<8x32xf32>
    %92 = arith.mulf %90, %91 : vector<8x32xf32>
    %93 = vector.extract_strided_slice %87 {offsets = [0, 1], sizes = [8, 1], strides = [1, 1]} : vector<8x4xf32> to vector<8x1xf32>
    %94 = vector.extract_strided_slice %84 {offsets = [1, 0], sizes = [1, 32], strides = [1, 1]} : vector<4x32xf32> to vector<1x32xf32>
    %95 = vector.broadcast %93 : vector<8x1xf32> to vector<8x32xf32>
    %96 = vector.broadcast %94 : vector<1x32xf32> to vector<8x32xf32>
    %97 = arith.mulf %95, %96 : vector<8x32xf32>
    %98 = arith.addf %92, %97 : vector<8x32xf32>
    %99 = vector.extract_strided_slice %87 {offsets = [0, 2], sizes = [8, 1], strides = [1, 1]} : vector<8x4xf32> to vector<8x1xf32>
    %100 = vector.extract_strided_slice %84 {offsets = [2, 0], sizes = [1, 32], strides = [1, 1]} : vector<4x32xf32> to vector<1x32xf32>
    %101 = vector.broadcast %99 : vector<8x1xf32> to vector<8x32xf32>
    %102 = vector.broadcast %100 : vector<1x32xf32> to vector<8x32xf32>
    %103 = arith.mulf %101, %102 : vector<8x32xf32>
    %104 = arith.addf %98, %103 : vector<8x32xf32>
    %105 = vector.extract_strided_slice %87 {offsets = [0, 3], sizes = [8, 1], strides = [1, 1]} : vector<8x4xf32> to vector<8x1xf32>
    %106 = vector.extract_strided_slice %84 {offsets = [3, 0], sizes = [1, 32], strides = [1, 1]} : vector<4x32xf32> to vector<1x32xf32>
    %107 = vector.broadcast %105 : vector<8x1xf32> to vector<8x32xf32>
    %108 = vector.broadcast %106 : vector<1x32xf32> to vector<8x32xf32>
    %109 = arith.mulf %107, %108 : vector<8x32xf32>
    %110 = arith.addf %104, %109 : vector<8x32xf32>
    %111 = vector.extract_strided_slice %85 {offsets = [0, 0], sizes = [8, 1], strides = [1, 1]} : vector<8x4xf32> to vector<8x1xf32>
    %112 = vector.extract_strided_slice %84 {offsets = [0, 0], sizes = [1, 32], strides = [1, 1]} : vector<4x32xf32> to vector<1x32xf32>
    %113 = vector.broadcast %111 : vector<8x1xf32> to vector<8x32xf32>
    %114 = vector.broadcast %112 : vector<1x32xf32> to vector<8x32xf32>
    %115 = arith.mulf %113, %114 : vector<8x32xf32>
    %116 = vector.extract_strided_slice %85 {offsets = [0, 1], sizes = [8, 1], strides = [1, 1]} : vector<8x4xf32> to vector<8x1xf32>
    %117 = vector.extract_strided_slice %84 {offsets = [1, 0], sizes = [1, 32], strides = [1, 1]} : vector<4x32xf32> to vector<1x32xf32>
    %118 = vector.broadcast %116 : vector<8x1xf32> to vector<8x32xf32>
    %119 = vector.broadcast %117 : vector<1x32xf32> to vector<8x32xf32>
    %120 = arith.mulf %118, %119 : vector<8x32xf32>
    %121 = arith.addf %115, %120 : vector<8x32xf32>
    %122 = vector.extract_strided_slice %85 {offsets = [0, 2], sizes = [8, 1], strides = [1, 1]} : vector<8x4xf32> to vector<8x1xf32>
    %123 = vector.extract_strided_slice %84 {offsets = [2, 0], sizes = [1, 32], strides = [1, 1]} : vector<4x32xf32> to vector<1x32xf32>
    %124 = vector.broadcast %122 : vector<8x1xf32> to vector<8x32xf32>
    %125 = vector.broadcast %123 : vector<1x32xf32> to vector<8x32xf32>
    %126 = arith.mulf %124, %125 : vector<8x32xf32>
    %127 = arith.addf %121, %126 : vector<8x32xf32>
    %128 = vector.extract_strided_slice %85 {offsets = [0, 3], sizes = [8, 1], strides = [1, 1]} : vector<8x4xf32> to vector<8x1xf32>
    %129 = vector.extract_strided_slice %84 {offsets = [3, 0], sizes = [1, 32], strides = [1, 1]} : vector<4x32xf32> to vector<1x32xf32>
    %130 = vector.broadcast %128 : vector<8x1xf32> to vector<8x32xf32>
    %131 = vector.broadcast %129 : vector<1x32xf32> to vector<8x32xf32>
    %132 = arith.mulf %130, %131 : vector<8x32xf32>
    %133 = arith.addf %127, %132 : vector<8x32xf32>
    %c80_19 = arith.constant 80 : index
    %c0_20 = arith.constant 0 : index
    %134 = vector.load %arg0[%c80_19, %c0_20] : memref<336x128xf32, #tpu.memory_space<vmem>>, vector<32x32xf32>
    %cst_21 = arith.constant dense<0.000000e+00> : vector<8x32xf32>
    %135 = tpu.matmul %110, %134, %cst_21 {dimension_numbers = #tpu.dot_dimension_numbers<[1], [0], [0], [1], [0, 0, 1, 1], [], []>} : vector<8x32xf32>, vector<32x32xf32>, vector<8x32xf32> -> vector<8x32xf32>
    %c112_22 = arith.constant 112 : index
    %c0_23 = arith.constant 0 : index
    %136 = vector.load %arg0[%c112_22, %c0_23] : memref<336x128xf32, #tpu.memory_space<vmem>>, vector<32x32xf32>
    %cst_24 = arith.constant dense<0.000000e+00> : vector<8x32xf32>
    %137 = tpu.matmul %133, %136, %cst_24 {dimension_numbers = #tpu.dot_dimension_numbers<[1], [0], [0], [1], [0, 0, 1, 1], [], []>} : vector<8x32xf32>, vector<32x32xf32>, vector<8x32xf32> -> vector<8x32xf32>
    %138 = arith.addf %135, %137 : vector<8x32xf32>
    %c144_25 = arith.constant 144 : index
    %c0_26 = arith.constant 0 : index
    %139 = vector.load %arg0[%c144_25, %c0_26] : memref<336x128xf32, #tpu.memory_space<vmem>>, vector<1x32xf32>
    %140 = vector.broadcast %139 : vector<1x32xf32> to vector<8x32xf32>
    %141 = arith.addf %138, %140 : vector<8x32xf32>
    %142 = math.tanh %141 : vector<8x32xf32>
    %143 = vector.extract_strided_slice %86 {offsets = [0, 0], sizes = [8, 1], strides = [1, 1]} : vector<8x8xf32> to vector<8x1xf32>
    %144 = vector.extract_strided_slice %142 {offsets = [0, 0], sizes = [1, 32], strides = [1, 1]} : vector<8x32xf32> to vector<1x32xf32>
    %145 = vector.broadcast %143 : vector<8x1xf32> to vector<8x32xf32>
    %146 = vector.broadcast %144 : vector<1x32xf32> to vector<8x32xf32>
    %147 = arith.mulf %145, %146 : vector<8x32xf32>
    %148 = vector.extract_strided_slice %86 {offsets = [0, 1], sizes = [8, 1], strides = [1, 1]} : vector<8x8xf32> to vector<8x1xf32>
    %149 = vector.extract_strided_slice %142 {offsets = [1, 0], sizes = [1, 32], strides = [1, 1]} : vector<8x32xf32> to vector<1x32xf32>
    %150 = vector.broadcast %148 : vector<8x1xf32> to vector<8x32xf32>
    %151 = vector.broadcast %149 : vector<1x32xf32> to vector<8x32xf32>
    %152 = arith.mulf %150, %151 : vector<8x32xf32>
    %153 = arith.addf %147, %152 : vector<8x32xf32>
    %154 = vector.extract_strided_slice %86 {offsets = [0, 2], sizes = [8, 1], strides = [1, 1]} : vector<8x8xf32> to vector<8x1xf32>
    %155 = vector.extract_strided_slice %142 {offsets = [2, 0], sizes = [1, 32], strides = [1, 1]} : vector<8x32xf32> to vector<1x32xf32>
    %156 = vector.broadcast %154 : vector<8x1xf32> to vector<8x32xf32>
    %157 = vector.broadcast %155 : vector<1x32xf32> to vector<8x32xf32>
    %158 = arith.mulf %156, %157 : vector<8x32xf32>
    %159 = arith.addf %153, %158 : vector<8x32xf32>
    %160 = vector.extract_strided_slice %86 {offsets = [0, 3], sizes = [8, 1], strides = [1, 1]} : vector<8x8xf32> to vector<8x1xf32>
    %161 = vector.extract_strided_slice %142 {offsets = [3, 0], sizes = [1, 32], strides = [1, 1]} : vector<8x32xf32> to vector<1x32xf32>
    %162 = vector.broadcast %160 : vector<8x1xf32> to vector<8x32xf32>
    %163 = vector.broadcast %161 : vector<1x32xf32> to vector<8x32xf32>
    %164 = arith.mulf %162, %163 : vector<8x32xf32>
    %165 = arith.addf %159, %164 : vector<8x32xf32>
    %166 = vector.extract_strided_slice %86 {offsets = [0, 4], sizes = [8, 1], strides = [1, 1]} : vector<8x8xf32> to vector<8x1xf32>
    %167 = vector.extract_strided_slice %142 {offsets = [4, 0], sizes = [1, 32], strides = [1, 1]} : vector<8x32xf32> to vector<1x32xf32>
    %168 = vector.broadcast %166 : vector<8x1xf32> to vector<8x32xf32>
    %169 = vector.broadcast %167 : vector<1x32xf32> to vector<8x32xf32>
    %170 = arith.mulf %168, %169 : vector<8x32xf32>
    %171 = arith.addf %165, %170 : vector<8x32xf32>
    %172 = vector.extract_strided_slice %86 {offsets = [0, 5], sizes = [8, 1], strides = [1, 1]} : vector<8x8xf32> to vector<8x1xf32>
    %173 = vector.extract_strided_slice %142 {offsets = [5, 0], sizes = [1, 32], strides = [1, 1]} : vector<8x32xf32> to vector<1x32xf32>
    %174 = vector.broadcast %172 : vector<8x1xf32> to vector<8x32xf32>
    %175 = vector.broadcast %173 : vector<1x32xf32> to vector<8x32xf32>
    %176 = arith.mulf %174, %175 : vector<8x32xf32>
    %177 = arith.addf %171, %176 : vector<8x32xf32>
    %178 = vector.extract_strided_slice %86 {offsets = [0, 6], sizes = [8, 1], strides = [1, 1]} : vector<8x8xf32> to vector<8x1xf32>
    %179 = vector.extract_strided_slice %142 {offsets = [6, 0], sizes = [1, 32], strides = [1, 1]} : vector<8x32xf32> to vector<1x32xf32>
    %180 = vector.broadcast %178 : vector<8x1xf32> to vector<8x32xf32>
    %181 = vector.broadcast %179 : vector<1x32xf32> to vector<8x32xf32>
    %182 = arith.mulf %180, %181 : vector<8x32xf32>
    %183 = arith.addf %177, %182 : vector<8x32xf32>
    %184 = vector.extract_strided_slice %86 {offsets = [0, 7], sizes = [8, 1], strides = [1, 1]} : vector<8x8xf32> to vector<8x1xf32>
    %185 = vector.extract_strided_slice %142 {offsets = [7, 0], sizes = [1, 32], strides = [1, 1]} : vector<8x32xf32> to vector<1x32xf32>
    %186 = vector.broadcast %184 : vector<8x1xf32> to vector<8x32xf32>
    %187 = vector.broadcast %185 : vector<1x32xf32> to vector<8x32xf32>
    %188 = arith.mulf %186, %187 : vector<8x32xf32>
    %189 = arith.addf %183, %188 : vector<8x32xf32>
    %c152_27 = arith.constant 152 : index
    %c0_28 = arith.constant 0 : index
    %190 = vector.load %arg0[%c152_27, %c0_28] : memref<336x128xf32, #tpu.memory_space<vmem>>, vector<32x32xf32>
    %cst_29 = arith.constant dense<0.000000e+00> : vector<8x32xf32>
    %191 = tpu.matmul %189, %190, %cst_29 {dimension_numbers = #tpu.dot_dimension_numbers<[1], [0], [0], [1], [0, 0, 1, 1], [], []>} : vector<8x32xf32>, vector<32x32xf32>, vector<8x32xf32> -> vector<8x32xf32>
    %c184_30 = arith.constant 184 : index
    %c0_31 = arith.constant 0 : index
    %192 = vector.load %arg0[%c184_30, %c0_31] : memref<336x128xf32, #tpu.memory_space<vmem>>, vector<32x32xf32>
    %cst_32 = arith.constant dense<0.000000e+00> : vector<8x32xf32>
    %193 = tpu.matmul %142, %192, %cst_32 {dimension_numbers = #tpu.dot_dimension_numbers<[1], [0], [0], [1], [0, 0, 1, 1], [], []>} : vector<8x32xf32>, vector<32x32xf32>, vector<8x32xf32> -> vector<8x32xf32>
    %194 = arith.addf %191, %193 : vector<8x32xf32>
    %c216_33 = arith.constant 216 : index
    %c0_34 = arith.constant 0 : index
    %195 = vector.load %arg0[%c216_33, %c0_34] : memref<336x128xf32, #tpu.memory_space<vmem>>, vector<1x32xf32>
    %196 = vector.broadcast %195 : vector<1x32xf32> to vector<8x32xf32>
    %197 = arith.addf %194, %196 : vector<8x32xf32>
    %198 = math.tanh %197 : vector<8x32xf32>
    %c224 = arith.constant 224 : index
    %c0_35 = arith.constant 0 : index
    %199 = vector.load %arg0[%c224, %c0_35] : memref<336x128xf32, #tpu.memory_space<vmem>>, vector<32x16xf32>
    %cst_36 = arith.constant dense<0.000000e+00> : vector<8x16xf32>
    %200 = tpu.matmul %198, %199, %cst_36 {dimension_numbers = #tpu.dot_dimension_numbers<[1], [0], [0], [1], [0, 0, 1, 1], [], []>} : vector<8x32xf32>, vector<32x16xf32>, vector<8x16xf32> -> vector<8x16xf32>
    %c256 = arith.constant 256 : index
    %c0_37 = arith.constant 0 : index
    %201 = vector.load %arg0[%c256, %c0_37] : memref<336x128xf32, #tpu.memory_space<vmem>>, vector<1x16xf32>
    %202 = vector.broadcast %201 : vector<1x16xf32> to vector<8x16xf32>
    %203 = arith.addf %200, %202 : vector<8x16xf32>
    %204 = math.tanh %203 : vector<8x16xf32>
    %c264 = arith.constant 264 : index
    %c0_38 = arith.constant 0 : index
    %205 = vector.load %arg0[%c264, %c0_38] : memref<336x128xf32, #tpu.memory_space<vmem>>, vector<16x16xf32>
    %cst_39 = arith.constant dense<0.000000e+00> : vector<8x16xf32>
    %206 = tpu.matmul %204, %205, %cst_39 {dimension_numbers = #tpu.dot_dimension_numbers<[1], [0], [0], [1], [0, 0, 1, 1], [], []>} : vector<8x16xf32>, vector<16x16xf32>, vector<8x16xf32> -> vector<8x16xf32>
    %c280 = arith.constant 280 : index
    %c0_40 = arith.constant 0 : index
    %207 = vector.load %arg0[%c280, %c0_40] : memref<336x128xf32, #tpu.memory_space<vmem>>, vector<1x16xf32>
    %208 = vector.broadcast %207 : vector<1x16xf32> to vector<8x16xf32>
    %209 = arith.addf %206, %208 : vector<8x16xf32>
    %210 = math.tanh %209 : vector<8x16xf32>
    %c288 = arith.constant 288 : index
    %c0_41 = arith.constant 0 : index
    %211 = vector.load %arg0[%c288, %c0_41] : memref<336x128xf32, #tpu.memory_space<vmem>>, vector<16x16xf32>
    %cst_42 = arith.constant dense<0.000000e+00> : vector<8x16xf32>
    %212 = tpu.matmul %210, %211, %cst_42 {dimension_numbers = #tpu.dot_dimension_numbers<[1], [0], [0], [1], [0, 0, 1, 1], [], []>} : vector<8x16xf32>, vector<16x16xf32>, vector<8x16xf32> -> vector<8x16xf32>
    %c304 = arith.constant 304 : index
    %c0_43 = arith.constant 0 : index
    %213 = vector.load %arg0[%c304, %c0_43] : memref<336x128xf32, #tpu.memory_space<vmem>>, vector<1x16xf32>
    %214 = vector.broadcast %213 : vector<1x16xf32> to vector<8x16xf32>
    %215 = arith.addf %212, %214 : vector<8x16xf32>
    %216 = math.tanh %215 : vector<8x16xf32>
    %c312 = arith.constant 312 : index
    %c0_44 = arith.constant 0 : index
    %217 = vector.load %arg0[%c312, %c0_44] : memref<336x128xf32, #tpu.memory_space<vmem>>, vector<16x2xf32>
    %cst_45 = arith.constant dense<0.000000e+00> : vector<8x2xf32>
    %218 = tpu.matmul %216, %217, %cst_45 {dimension_numbers = #tpu.dot_dimension_numbers<[1], [0], [0], [1], [0, 0, 1, 1], [], []>} : vector<8x16xf32>, vector<16x2xf32>, vector<8x2xf32> -> vector<8x2xf32>
    %c328 = arith.constant 328 : index
    %c0_46 = arith.constant 0 : index
    %219 = vector.load %arg0[%c328, %c0_46] : memref<336x128xf32, #tpu.memory_space<vmem>>, vector<1x2xf32>
    %220 = vector.broadcast %219 : vector<1x2xf32> to vector<8x2xf32>
    %221 = arith.addf %218, %220 : vector<8x2xf32>
    %222 = vector.extract_strided_slice %221 {offsets = [0, 0], sizes = [8, 1], strides = [1, 1]} : vector<8x2xf32> to vector<8x1xf32>
    %223 = vector.extract_strided_slice %221 {offsets = [0, 1], sizes = [8, 1], strides = [1, 1]} : vector<8x2xf32> to vector<8x1xf32>
    %224 = arith.mulf %222, %222 : vector<8x1xf32>
    %225 = vector.shape_cast %224 : vector<8x1xf32> to vector<1x8x1xf32>
    %cst_47 = arith.constant dense<0.000000e+00> : vector<1xf32>
    %226 = vector.multi_reduction <add>, %225, %cst_47 [1, 2] : vector<1x8x1xf32> to vector<1xf32>
    %227 = vector.shape_cast %226 : vector<1xf32> to vector<1x1x1xf32>
    %228 = vector.extract %227[0, 0, 0] : f32 from vector<1x1x1xf32>
    %229 = vector.broadcast %228 : f32 to vector<1x1xf32>
    %cst_48 = arith.constant 9.99999996E-13 : f32
    %230 = vector.broadcast %cst_48 : f32 to vector<1x1xf32>
    %231 = arith.addf %229, %230 : vector<1x1xf32>
    %232 = math.rsqrt %231 : vector<1x1xf32>
    %233 = vector.broadcast %232 : vector<1x1xf32> to vector<8x1xf32>
    %234 = arith.mulf %222, %233 : vector<8x1xf32>
    %235 = arith.mulf %234, %223 : vector<8x1xf32>
    %236 = vector.shape_cast %235 : vector<8x1xf32> to vector<1x8x1xf32>
    %cst_49 = arith.constant dense<0.000000e+00> : vector<1xf32>
    %237 = vector.multi_reduction <add>, %236, %cst_49 [1, 2] : vector<1x8x1xf32> to vector<1xf32>
    %238 = vector.shape_cast %237 : vector<1xf32> to vector<1x1x1xf32>
    %239 = vector.extract %238[0, 0, 0] : f32 from vector<1x1x1xf32>
    %240 = vector.broadcast %239 : f32 to vector<1x1xf32>
    %241 = vector.broadcast %240 : vector<1x1xf32> to vector<8x1xf32>
    %242 = arith.mulf %241, %234 : vector<8x1xf32>
    %243 = arith.subf %223, %242 : vector<8x1xf32>
    %244 = arith.mulf %243, %243 : vector<8x1xf32>
    %245 = vector.shape_cast %244 : vector<8x1xf32> to vector<1x8x1xf32>
    %cst_50 = arith.constant dense<0.000000e+00> : vector<1xf32>
    %246 = vector.multi_reduction <add>, %245, %cst_50 [1, 2] : vector<1x8x1xf32> to vector<1xf32>
    %247 = vector.shape_cast %246 : vector<1xf32> to vector<1x1x1xf32>
    %248 = vector.extract %247[0, 0, 0] : f32 from vector<1x1x1xf32>
    %249 = vector.broadcast %248 : f32 to vector<1x1xf32>
    %cst_51 = arith.constant 9.99999996E-13 : f32
    %250 = vector.broadcast %cst_51 : f32 to vector<1x1xf32>
    %251 = arith.addf %249, %250 : vector<1x1xf32>
    %252 = math.rsqrt %251 : vector<1x1xf32>
    %253 = vector.broadcast %252 : vector<1x1xf32> to vector<8x1xf32>
    %254 = arith.mulf %243, %253 : vector<8x1xf32>
    %255 = tpu.iota {dimensions = array<i32: 1>} : vector<8x2xi32>
    %c0_i32 = arith.constant 0 : i32
    %256 = vector.broadcast %c0_i32 : i32 to vector<8x2xi32>
    %257 = arith.cmpi eq, %255, %256 : vector<8x2xi32>
    %258 = vector.shape_cast %234 : vector<8x1xf32> to vector<8x1xf32>
    %259 = vector.broadcast %258 : vector<8x1xf32> to vector<8x2xf32>
    %260 = vector.shape_cast %254 : vector<8x1xf32> to vector<8x1xf32>
    %261 = vector.broadcast %260 : vector<8x1xf32> to vector<8x2xf32>
    %262 = arith.select %257, %259, %261 : vector<8x2xi1>, vector<8x2xf32>
    %c0_52 = arith.constant 0 : index
    %c0_53 = arith.constant 0 : index
    %263 = vector.load %arg1[%c0_52, %c0_53] : memref<8x2xf32, #tpu.memory_space<vmem>>, vector<8x2xf32>
    tpu.vector_store %arg1[%c0_52, %c0_53], %262 {strides = array<i32>} : memref<8x2xf32, #tpu.memory_space<vmem>>, vector<8x2xf32>,
    return
  }
}

</mosaic_0001>

<bundles_post_ra>
// kernel: forward.1
= control target key start
LH: loop header
LB: loop body
LE: loop exit
PB: predicated region body
PF: predicated region fallthrough
CT: control target
= control target key end

     0   :  { %6 = vsyncpa [#allocation3], 0  ;;  %s747_s9 = smov [#allocation2]   ;;  %s748_s11 = smov 128   ;;  %s823_s0 = inlined_call_operand.hbm [shape: f32[336,128], index: 0, kind: input, shape index: {}]   ;;  %s824_s1 = inlined_call_operand.vmem [shape: f32[8,2], index: 1, kind: output, shape index: {}]  }
   0x1   :  { %s11_s8 = sshll.u32 %s823_s0, 4  ;;  %s13_s10 = sshll.u32 %s747_s9, 4  ;;  %s12_s8 = int_to_ptr.hbm [resolvable:$true] %s11_s8  ;;  %s14_s10 = int_to_ptr.vmem [resolvable:$true] %s13_s10 }
   0x2   :  { %s749_s12 = smov 8  }
   0x3   :  { %19 = dma.hbm_to_vmem [thread:$0]  %s12_s8, 5376, %s14_s10, [#allocation3], %s748_s11, %s748_s11, %s749_s12  }
   0x4   :  { %745 = dma.done.wait [#allocation3], 5376  }
   0x5   :  { %746 = vsyncadd [#allocation3], 4294961920  ;;  %v750_v0 = vmov 0   ;;  %v24_v1 = vld [vmem:[#allocation2] sm:$0x3]  ;;  %v751_v4 = vmov 1  }
   0x6   :  { %668 = vset.pattern.permute.xlu0 %v750_v0  ;;  %670 = vset.pattern.permute.xlu1 %v750_v0  ;;  %v48_v2 = vld [vmem:[#allocation2 + $0x18] sm:$0xf]  ;;  %v46_v3 = vld [vmem:[#allocation2 + $0x8] sm:$0xf]  ;;  %v47_v5 = vld [vmem:[#allocation2 + $0x10] sm:$0xf] }
   0x7   :  { %672 = vset.pattern.permute.xlu2 %v750_v0  ;;  %28 = vperm.xlu0 %668, %v24_v1   ;;  %v82_v6 = vld [vmem:[#allocation2 + $0x88] sm:$0xff]  ;;  %v81_v8 = vld [vmem:[#allocation2 + $0x80] sm:$0xff]  ;;  %v80_v10 = vld [vmem:[#allocation2 + $0x78] sm:$0xff]  ;;  %v752_v15 = vmov 3   ;;  %v753_v16 = vmov 2   ;;  %vm83_vm0 = vcmask 261120  }
   0x8   :  { %51 = vperm.xlu1 %670, %v48_v2   ;;  %65 = vperm.xlu2 %672, %v46_v3   ;;  %v78_v7 = vld [vmem:[#allocation2 + $0x68] sm:$0xff]  ;;  %v77_v9 = vld [vmem:[#allocation2 + $0x60] sm:$0xff]  ;;  %v76_v11 = vld [vmem:[#allocation2 + $0x58] sm:$0xff]  ;;  %vm461_vm1 = vcmask 130048   ;;  %vm542_vm2 = vcmask 7168   ;;  %s758_s0 = smov 127  }
   0x9   :  { %99 = vmatpush.msra.mxu0 %v82_v6  ;;  %122 = vmatpush.msra.mxu1 %v78_v7  ;;  %v79_v12 = vld [vmem:[#allocation2 + $0x70] sm:$0xff]  ;;  %v25_v17 = vld [vmem:[#allocation2 + $0x38] sm:$0x3]  ;;  %v40_v23 = vld [vmem:[#allocation2 + $0x40] sm:$0x3]  ;;  %s759_s15 = smov 1  }
   0xa   :  { %v75_v13 = vld [vmem:[#allocation2 + $0x50] sm:$0xff]  ;;  %v31_v18 = vperm.slane %v25_v17, 0  ;;  %v37_v19 = vperm.slane %v25_v17, 1  ;;  %v694_v24 = vld [vmem:[#allocation2 + $0x48] ss:$0 sm:$0xff]  ;;  %v167_v43 = vld [vmem:[#allocation2 + $0xc0] sm:$0xff] }
   0xb   :  { %100 = vmatpush.msra.mxu0 %v81_v8  ;;  %123 = vmatpush.msra.mxu1 %v77_v9  ;;  %v169_v41 = vld [vmem:[#allocation2 + $0xd0] sm:$0xff]  ;;  %v168_v42 = vld [vmem:[#allocation2 + $0xc8] sm:$0xff]  ;;  %v166_v44 = vld [vmem:[#allocation2 + $0xb8] sm:$0xff]  ;;  %vm630_vm10 = vcmask 15360  }
   0xc   :  { %185 = vmatpush.msra.mxu2 %v169_v41  ;;  %v165_v45 = vld [vmem:[#allocation2 + $0xb0] sm:$0xff]  ;;  %v164_v46 = vld [vmem:[#allocation2 + $0xa8] sm:$0xff]  ;;  %v163_v47 = vld [vmem:[#allocation2 + $0xa0] sm:$0xff] }
   0xd   :  { %101 = vmatpush.msra.mxu0 %v80_v10  ;;  %124 = vmatpush.msra.mxu1 %v76_v11  ;;  %v162_v48 = vld [vmem:[#allocation2 + $0x98] sm:$0xff]  ;;  %v222_v49 = vld [vmem:[#allocation2 + $0x30] sm:$0xff]  ;;  %v220_v50 = vld [vmem:[#allocation2 + $0x20] sm:$0xff] }
   0xe   :  { %186 = vmatpush.msra.mxu2 %v168_v42  ;;  %208 = vmatpush.msra.mxu3 %v165_v45  ;;  %v787_v51 = vld [vmem:[#allocation2 + $0x90] ss:$0 sm:$0xff] }
   0xf   :  { %669 = vset.pattern.permute.xlu0 %v751_v4  ;;  %102 = vmatpush.msra.mxu0 %v79_v12 }
  0x10   :  { %671 = vset.pattern.permute.xlu1 %v751_v4  ;;  %34 = vperm.xlu0 %669, %v24_v1  }
  0x11   :  { %57 = vperm.xlu1 %671, %v48_v2   ;;  %673 = vset.pattern.permute.xlu2 %v751_v4 }
  0x12   :  { %70 = vperm.xlu2 %673, %v46_v3   ;;  %125 = vmatpush.msra.mxu1 %v75_v13 }
  0x13   :  { %290 = vmatpush.msrb.mxu0 %v82_v6  ;;  %187 = vmatpush.msra.mxu2 %v167_v43 }
  0x14   :  { %313 = vmatpush.msrb.mxu1 %v78_v7  ;;  %209 = vmatpush.msra.mxu3 %v164_v46 }
  0x15   :  { %291 = vmatpush.msrb.mxu0 %v81_v8  ;;  %188 = vmatpush.msra.mxu2 %v166_v44 }
  0x16   :  { %314 = vmatpush.msrb.mxu1 %v77_v9  ;;  %210 = vmatpush.msra.mxu3 %v163_v47 }
  0x17   :  { %292 = vmatpush.msrb.mxu0 %v80_v10  ;;  %394 = vmatpush.msrb.mxu2 %v169_v41 }
  0x18   :  { %675 = vset.pattern.permute.xlu0 %v753_v16  ;;  %315 = vmatpush.msrb.mxu1 %v76_v11  ;;  %v221_v11 = vld [vmem:[#allocation2 + $0x28] sm:$0xff] }
  0x19   :  { %674 = vset.pattern.permute.xlu1 %v750_v0  ;;  %149 = vperm.xlu0 %675, %v47_v5  }
  0x1a   :  { %136 = vperm.xlu1 %674, %v47_v5   ;;  %142 = vperm.xlu2 %673, %v47_v5  }
  0x1b   :  { %293 = vmatpush.msrb.mxu0 %v79_v12  ;;  %316 = vmatpush.msrb.mxu1 %v75_v13 }
  0x1c   :  { %395 = vmatpush.msrb.mxu2 %v168_v42  ;;  %211 = vmatpush.msra.mxu3 %v162_v48 }
  0x1e   :  { %396 = vmatpush.msrb.mxu2 %v167_v43  ;;  %417 = vmatpush.msrb.mxu3 %v165_v45 }
  0x20   :  { %397 = vmatpush.msrb.mxu2 %v166_v44  ;;  %418 = vmatpush.msrb.mxu3 %v164_v46 }
  0x21   :  { %679 = vset.pattern.permute.xlu0 %v751_v4 }
  0x22   :  { %677 = vset.pattern.permute.xlu2 %v750_v0  ;;  %676 = vset.pattern.permute.xlu1 %v752_v15 }
  0x23   :  { %156 = vperm.xlu1 %676, %v47_v5   ;;  %225 = vperm.xlu2 %677, %v222_v49  }
  0x24   :  { %258 = vperm.xlu0 %679, %v220_v50   ;;  %419 = vmatpush.msrb.mxu3 %v163_v47 }
  0x26   :  { %420 = vmatpush.msrb.mxu3 %v162_v48 }
  0x2b   :  { %678 = vset.pattern.permute.xlu1 %v751_v4  ;;  %253 = vperm.xlu2 %677, %v220_v50  }
  0x2c   :  { %231 = vperm.xlu1 %678, %v222_v49   ;;  %684 = vset.pattern.permute.xlu0 %v750_v0 }
  0x2d   :  { %325 = vperm.xlu0 %684, %v221_v11  }
  0x33   :  { %681 = vset.pattern.permute.xlu2 %v753_v16 }
  0x34   :  { %680 = vset.pattern.permute.xlu1 %v753_v16  ;;  %264 = vperm.xlu2 %681, %v220_v50  }
  0x35   :  { %238 = vperm.xlu1 %680, %v222_v49  }
  0x3c   :  { %683 = vset.pattern.permute.xlu2 %v752_v15 }
  0x3d   :  { %682 = vset.pattern.permute.xlu1 %v752_v15  ;;  %270 = vperm.xlu2 %683, %v220_v50  }
  0x3e   :  { %245 = vperm.xlu1 %682, %v222_v49  }
  0x45   :  { %686 = vset.pattern.permute.xlu2 %v753_v16 }
  0x46   :  { %685 = vset.pattern.permute.xlu1 %v751_v4  ;;  %338 = vperm.xlu2 %686, %v221_v11  }
  0x47   :  { %331 = vperm.xlu1 %685, %v221_v11  }
  0x4f   :  { %687 = vset.pattern.permute.xlu1 %v752_v15  ;;  %v757_v15 = vmov 7  }
  0x50   :  { %345 = vperm.xlu1 %687, %v221_v11  }
  0x62   :  { %v66_v29 = vpop.permute.xlu2 %65 }
  0x6c   :  { %v71_v34 = vpop.permute.xlu2 %70 }
  0x74   :  { %v143_v61 = vpop.permute.xlu2 %142 }
  0x79   :  { %v29_v14 = vpop.permute.xlu0 %28 }
  0x7a   :  { %v32_v21 = vmul.f32 %v31_v18, %v29_v14  ;;  %v52_v27 = vpop.permute.xlu1 %51  ;;  %v799_v14 = vld [vmem:[#allocation2 + $0xd8] ss:$0 sm:$0xff] }
  0x7d   :  { %v226_v10 = vpop.permute.xlu2 %225 }
  0x82   :  { %v35_v20 = vpop.permute.xlu0 %34 }
  0x83   :  { %v38_v22 = vmul.f32 %v37_v19, %v35_v20  ;;  %v58_v31 = vpop.permute.xlu1 %57  ;;  %v754_v19 = vmov 5  }
  0x84   :  { %689 = vset.pattern.permute.xlu0 %v754_v19 }
  0x85   :  { %v39_v25 = vadd.f32 %v38_v22, %v32_v21  ;;  %v254_v13 = vpop.permute.xlu2 %253  ;;  %359 = vperm.xlu0 %689, %v221_v11   ;;  %v755_v21 = vmov 4  }
  0x86   :  { %688 = vset.pattern.permute.xlu2 %v755_v21 }
  0x87   :  { %v41_v26 = vadd.f32 %v40_v23, %v39_v25  ;;  %352 = vperm.xlu2 %688, %v221_v11  }
  0x89   :  { %v44_v28 = vadd.f32 %v694_v24, %v41_v26  ;;  %v756_v24 = vmov 6  }
  0x8a   :  { %690 = vset.pattern.permute.xlu1 %v756_v24  ;;  %v427_v24 = vld [vmem:[#allocation2 + $0xe0] sm:$0xff] }
  0x8b   :  { %701 = vtanh.f32 %v44_v28  ;;  %v150_v62 = vpop.permute.xlu0 %149  ;;  %366 = vperm.xlu1 %690, %v221_v11  }
  0x8c   :  { %v137_v56 = vpop.permute.xlu1 %136 }
  0x8d   :  { %693 = vset.pattern.permute.xlu0 %v751_v4 }
  0x8e   :  { %v265_v23 = vpop.permute.xlu2 %264 }
  0x8f   :  { %691 = vset.pattern.permute.xlu2 %v757_v15 }
  0x90   :  { %373 = vperm.xlu2 %691, %v221_v11  }
  0x91   :  { %v702_v30 = vpop.eup %701 }
  0x92   :  { %v54_v32 = vperm.slane %v702_v30, 0  ;;  %v60_v33 = vperm.slane %v702_v30, 1 }
  0x93   :  { %692 = vset.pattern.permute.xlu1 %v750_v0 }
  0x94   :  { %v68_v35 = vmul.f32 %v66_v29, %v54_v32  ;;  %v55_v36 = vmul.f32 %v54_v32, %v52_v27  ;;  %v73_v37 = vmul.f32 %v71_v34, %v60_v33  ;;  %v61_v38 = vmul.f32 %v60_v33, %v58_v31 }
  0x95   :  { %v157_v3 = vpop.permute.xlu1 %156 }
  0x96   :  { %v74_v39 = vadd.f32 %v73_v37, %v68_v35  ;;  %v62_v40 = vadd.f32 %v61_v38, %v55_v36  ;;  %v259_v29 = vpop.permute.xlu0 %258 }
  0x97   :  { %v271_v38 = vpop.permute.xlu2 %270 }
  0x98   :  { %637 = vmatmul.msk.f32.vlgmr.msra.gmra.mxu0 %vm83_vm0, %v74_v39  ;;  %638 = vmatmul.msk.f32.vlgmr.msra.gmra.mxu1 %vm83_vm0, %v62_v40 }
  0x9e   :  { %v232_v12 = vpop.permute.xlu1 %231 }
  0xa0   :  { %v339_v50 = vpop.permute.xlu2 %338 }
  0xa7   :  { %v239_v22 = vpop.permute.xlu1 %238 }
  0xb0   :  { %v246_v33 = vpop.permute.xlu1 %245 }
  0xb9   :  { %v332_v48 = vpop.permute.xlu1 %331 }
 0x115   :  { %v104_v52 = vpop.f32.mrf.mxu0  ;;  %v127_v53 = vpop.f32.mrf.mxu1 }
 0x116   :  { %v128_v54 = vadd.f32 %v127_v53, %v104_v52  ;;  %v326_v53 = vpop.permute.xlu0 %325 }
 0x118   :  { %v132_v55 = vadd.f32 %v787_v51, %v128_v54 }
 0x11a   :  { %703 = vtanh.f32 %v132_v55  ;;  %v346_v55 = vpop.permute.xlu1 %345 }
 0x120   :  { %v704_v57 = vpop.eup %703 }
 0x121   :  { %v139_v58 = vperm.slane %v704_v57, 0  ;;  %v145_v59 = vperm.slane %v704_v57, 1  ;;  %639 = vmatmul.msk.f32.vlgmr.msra.gmra.mxu2 %vm83_vm0, %v704_v57  ;;  %v152_v60 = vperm.slane %v704_v57, 2  ;;  %v159_v2 = vperm.slane %v704_v57, 3  ;;  %v353_v57 = vpop.permute.xlu2 %352 }
 0x123   :  { %v140_v63 = vmul.f32 %v139_v58, %v137_v56  ;;  %v146_v1 = vmul.f32 %v145_v59, %v143_v61  ;;  %v153_v6 = vmul.f32 %v152_v60, %v150_v62  ;;  %v160_v7 = vmul.f32 %v159_v2, %v157_v3 }
 0x125   :  { %v147_v5 = vadd.f32 %v146_v1, %v140_v63 }
 0x127   :  { %v154_v8 = vadd.f32 %v153_v6, %v147_v5 }
 0x129   :  { %v161_v9 = vadd.f32 %v160_v7, %v154_v8 }
 0x12b   :  { %640 = vmatmul.msk.f32.vlgmr.msra.gmra.mxu3 %vm83_vm0, %v161_v9  ;;  %v367_v9 = vpop.permute.xlu1 %366 }
 0x1a4   :  { %v190_v17 = vpop.f32.mrf.mxu2 }
 0x1ae   :  { %v213_v18 = vpop.f32.mrf.mxu3 }
 0x1af   :  { %v214_v20 = vadd.f32 %v213_v18, %v190_v17 }
 0x1b1   :  { %v218_v16 = vadd.f32 %v799_v14, %v214_v20 }
 0x1b3   :  { %705 = vtanh.f32 %v218_v16  ;;  %v430_v16 = vld [vmem:[#allocation2 + $0xf8] sm:$0xff] }
 0x1b4   :  { %448 = vmatpush.msra.mxu0 %v430_v16 }
 0x1b9   :  { %v706_v25 = vpop.eup %705 }
 0x1ba   :  { %v228_v26 = vperm.slane %v706_v25, 0  ;;  %v234_v27 = vperm.slane %v706_v25, 1  ;;  %v241_v28 = vperm.slane %v706_v25, 2  ;;  %v248_v32 = vperm.slane %v706_v25, 3 }
 0x1bc   :  { %v229_v30 = vmul.f32 %v228_v26, %v226_v10  ;;  %v235_v31 = vmul.f32 %v234_v27, %v232_v12  ;;  %v256_v34 = vmul.f32 %v254_v13, %v228_v26  ;;  %v261_v35 = vmul.f32 %v259_v29, %v234_v27  ;;  %v374_v13 = vpop.permute.xlu2 %373  ;;  %v458_v29 = vld [vmem:[#allocation2 + $0x110] sm:$0xff] }
 0x1bd   :  { %v242_v37 = vmul.f32 %v241_v28, %v239_v22  ;;  %v267_v39 = vmul.f32 %v265_v23, %v241_v28  ;;  %v249_v41 = vmul.f32 %v248_v32, %v246_v33  ;;  %v273_v42 = vmul.f32 %v271_v38, %v248_v32  ;;  %v429_v22 = vld [vmem:[#allocation2 + $0xf0] sm:$0xff]  ;;  %v428_v23 = vld [vmem:[#allocation2 + $0xe8] sm:$0xff]  ;;  %479 = vmatpush.msra.mxu1 %v458_v29 }
 0x1be   :  { %v236_v36 = vadd.f32 %v235_v31, %v229_v30  ;;  %v262_v4 = vadd.f32 %v261_v35, %v256_v34  ;;  %449 = vmatpush.msra.mxu0 %v429_v22  ;;  %v457_v30 = vld [vmem:[#allocation2 + $0x108] sm:$0xff]  ;;  %v697_v31 = vld [vmem:[#allocation2 + $0x100] ss:$0 sm:$0xff] }
 0x1bf   :  { %480 = vmatpush.msra.mxu1 %v457_v30  ;;  %v487_v35 = vld [vmem:[#allocation2 + $0x128] sm:$0xff] }
 0x1c0   :  { %v243_v40 = vadd.f32 %v242_v37, %v236_v36  ;;  %v268_v43 = vadd.f32 %v267_v39, %v262_v4  ;;  %450 = vmatpush.msra.mxu0 %v428_v23  ;;  %v486_v36 = vld [vmem:[#allocation2 + $0x120] sm:$0xff]  ;;  %507 = vmatpush.msra.mxu2 %v487_v35 }
 0x1c1   :  { %v515_v4 = vld [vmem:[#allocation2 + $0x140] sm:$0xff] }
 0x1c2   :  { %v250_v44 = vadd.f32 %v249_v41, %v243_v40  ;;  %v274_v45 = vadd.f32 %v273_v42, %v268_v43  ;;  %451 = vmatpush.msra.mxu0 %v427_v24  ;;  %508 = vmatpush.msra.mxu2 %v486_v36  ;;  %v514_v40 = vld [vmem:[#allocation2 + $0x138] sm:$0xff]  ;;  %v699_v41 = vld [vmem:[#allocation2 + $0x130] ss:$0 sm:$0xff] }
 0x1c3   :  { %535 = vmatpush.msra.mxu3 %v515_v4 }
 0x1c4   :  { %642 = vmatmul.msk.f32.vlgmr.msrb.gmra.mxu1 %vm83_vm0, %v250_v44  ;;  %641 = vmatmul.msk.f32.vlgmr.msrb.gmra.mxu0 %vm83_vm0, %v274_v45  ;;  %v700_v45 = vld [vmem:[#allocation2 + $0x148] ss:$0 sm:$0xff] }
 0x1c5   :  { %536 = vmatpush.msra.mxu3 %v514_v40 }
 0x241   :  { %v318_v46 = vpop.f32.mrf.mxu1  ;;  %v295_v47 = vpop.f32.mrf.mxu0 }
 0x242   :  { %v319_v49 = vadd.f32 %v318_v46, %v295_v47 }
 0x244   :  { %v321_v52 = vadd.f32 %v787_v51, %v319_v49  ;;  %v360_v51 = vpop.permute.xlu0 %359 }
 0x246   :  { %707 = vtanh.f32 %v321_v52 }
 0x24c   :  { %v708_v54 = vpop.eup %707 }
 0x24d   :  { %v328_v0 = vperm.slane %v708_v54, 0  ;;  %v334_v56 = vperm.slane %v708_v54, 1  ;;  %643 = vmatmul.msk.f32.vlgmr.msrb.gmra.mxu2 %vm83_vm0, %v708_v54  ;;  %v341_v58 = vperm.slane %v708_v54, 2  ;;  %v348_v59 = vperm.slane %v708_v54, 3 }
 0x24e   :  { %v355_v62 = vperm.slane %v708_v54, 4  ;;  %v362_v5 = vperm.slane %v708_v54, 5  ;;  %v369_v7 = vperm.slane %v708_v54, 6  ;;  %v376_v10 = vperm.slane %v708_v54, 7 }
 0x24f   :  { %v335_v60 = vmul.f32 %v334_v56, %v332_v48  ;;  %v329_v61 = vmul.f32 %v328_v0, %v326_v53  ;;  %v342_v63 = vmul.f32 %v341_v58, %v339_v50  ;;  %v349_v2 = vmul.f32 %v348_v59, %v346_v55 }
 0x250   :  { %v356_v6 = vmul.f32 %v355_v62, %v353_v57  ;;  %v363_v12 = vmul.f32 %v362_v5, %v360_v51  ;;  %v370_v17 = vmul.f32 %v369_v7, %v367_v9  ;;  %v377_v19 = vmul.f32 %v376_v10, %v374_v13 }
 0x251   :  { %v336_v1 = vadd.f32 %v335_v60, %v329_v61 }
 0x253   :  { %v343_v3 = vadd.f32 %v342_v63, %v336_v1 }
 0x255   :  { %v350_v8 = vadd.f32 %v349_v2, %v343_v3 }
 0x257   :  { %v357_v11 = vadd.f32 %v356_v6, %v350_v8 }
 0x259   :  { %v364_v18 = vadd.f32 %v363_v12, %v357_v11 }
 0x25b   :  { %v371_v20 = vadd.f32 %v370_v17, %v364_v18 }
 0x25d   :  { %v378_v21 = vadd.f32 %v377_v19, %v371_v20 }
 0x25f   :  { %644 = vmatmul.msk.f32.vlgmr.msrb.gmra.mxu3 %vm83_vm0, %v378_v21 }
 0x2d0   :  { %v399_v25 = vpop.f32.mrf.mxu2 }
 0x2e2   :  { %v422_v15 = vpop.f32.mrf.mxu3 }
 0x2e3   :  { %v423_v26 = vadd.f32 %v422_v15, %v399_v25 }
 0x2e5   :  { %v425_v27 = vadd.f32 %v799_v14, %v423_v26  ;;  %v698_v14 = vld [vmem:[#allocation2 + $0x118] ss:$0 sm:$0xff] }
 0x2e7   :  { %709 = vtanh.f32 %v425_v27 }
 0x2ed   :  { %v710_v28 = vpop.eup %709 }
 0x2ee   :  { %645 = vmatmul.msk.f32.vlgmr.msra.gmra.mxu0 %vm83_vm0, %v710_v28 }
 0x36b   :  { %v453_v32 = vpop.f32.mrf.mxu0 }
 0x36c   :  { %v454_v33 = vadd.f32 %v697_v31, %v453_v32 }
 0x36e   :  { %711 = vtanh.f32 %v454_v33 }
 0x374   :  { %v712_v34 = vpop.eup %711 }
 0x375   :  { %646 = vmatmul.msk.f32.vlgmr.msra.gmra.mxu1 %vm461_vm1, %v712_v34 }
 0x3f2   :  { %v482_v37 = vpop.f32.mrf.mxu1 }
 0x3f3   :  { %v483_v38 = vadd.f32 %v698_v14, %v482_v37 }
 0x3f5   :  { %713 = vtanh.f32 %v483_v38  ;;  %v616_v38 = vlaneseq }
 0x3fb   :  { %v714_v39 = vpop.eup %713 }
 0x3fc   :  { %647 = vmatmul.msk.f32.vlgmr.msra.gmra.mxu2 %vm461_vm1, %v714_v39  ;;  %v617_v39 = vand.u32 127, %v616_v38 }
 0x3fe   :  { %vm618_vm9 = vcmp.eq.s32.totalorder %v617_v39, 0 }
 0x47f   :  { %v510_v42 = vpop.f32.mrf.mxu2 }
 0x480   :  { %v511_v43 = vadd.f32 %v699_v41, %v510_v42 }
 0x482   :  { %715 = vtanh.f32 %v511_v43 }
 0x488   :  { %v716_v44 = vpop.eup %715 }
 0x489   :  { %648 = vmatmul.msk.f32.vlgmr.msra.gmra.mxu3 %vm461_vm1, %v716_v44 }
 0x50c   :  { %v538_v46 = vpop.f32.mrf.mxu3 }
 0x50d   :  { %v539_v47 = vadd.f32 %v700_v45, %v538_v46 }
 0x50f   :  { %567 = vrot.lane.b32.xlu2 %v539_v47, %s758_s0  ;;  %v541_v48 = vmul.f32 %v539_v47, %v539_v47 }
 0x511   :  { %v543_v49 = vsel %vm542_vm2, %v541_v48, 0.0 }
 0x512   :  { %544 = vadd.xlane.f32.xlu1 %v543_v49 }
 0x569   :  { %v568_v5 = vpop.permute.xlu2 %567 }
 0x585   :  { %v545_v50 = vpop.xlane.xlu1 %544 }
 0x586   :  { %v546_v52 = vrot.slane %v545_v50, 4 }
 0x588   :  { %v547_v53 = vadd.f32 %v546_v52, %v545_v50 }
 0x58a   :  { %v548_v54 = vrot.slane %v547_v53, 2 }
 0x58c   :  { %v549_v55 = vadd.f32 %v548_v54, %v547_v53 }
 0x58e   :  { %v550_v0 = vrot.slane %v549_v55, 1 }
 0x590   :  { %v551_v56 = vadd.f32 %v550_v0, %v549_v55 }
 0x592   :  { %649 = vpush %v551_v56 }
 0x5c3   :  { %s650_s13 = spop %649 }
 0x5c4   :  { %v553_v57 = vstv %s650_s13 }
 0x5c5   :  { %v554_v58 = vadd.f32 1e-12, %v553_v57 }
 0x5c7   :  { %717 = vrsqrt.f32 %v554_v58  ;;  %vm561_vm4 = vweird.f32 %v554_v58 }
 0x5cd   :  { %v718_v59 = vpop.eup %717 }
 0x5ce   :  { %v556_v60 = vmul.f32 %v718_v59, %v554_v58  ;;  %vm562_vm3 = vweird.f32 %v718_v59 }
 0x5cf   :  { %vm563_vm5 = vmor %vm561_vm4, %vm562_vm3 }
 0x5d0   :  { %v557_v61 = vmul.f32 %v718_v59, %v556_v60 }
 0x5d2   :  { %v558_v62 = vmul.f32 0.5, %v557_v61 }
 0x5d4   :  { %v559_v63 = vsub.f32 1.5, %v558_v62 }
 0x5d6   :  { %v560_v1 = vmul.f32 %v718_v59, %v559_v63 }
 0x5d8   :  { %v564_v2 = vsel %vm563_vm5, %v718_v59, %v560_v1 }
 0x5d9   :  { %v565_v3 = vmul.f32 %v564_v2, %v539_v47 }
 0x5db   :  { %621 = vperm.xlu1 %692, %v565_v3   ;;  %v570_v51 = vmul.f32 %v568_v5, %v565_v3 }
 0x5dd   :  { %v571_v6 = vsel %vm542_vm2, %v570_v51, 0.0 }
 0x5de   :  { %572 = vadd.xlane.f32.xlu0 %v571_v6 }
 0x64d   :  { %v622_v4 = vpop.permute.xlu1 %621 }
 0x651   :  { %v573_v7 = vpop.xlane.xlu0 %572 }
 0x652   :  { %v574_v8 = vrot.slane %v573_v7, 4 }
 0x654   :  { %v575_v9 = vadd.f32 %v574_v8, %v573_v7 }
 0x656   :  { %v576_v10 = vrot.slane %v575_v9, 2 }
 0x658   :  { %v577_v11 = vadd.f32 %v576_v10, %v575_v9 }
 0x65a   :  { %v578_v12 = vrot.slane %v577_v11, 1 }
 0x65c   :  { %v579_v13 = vadd.f32 %v578_v12, %v577_v11 }
 0x65e   :  { %651 = vpush %v579_v13 }
 0x68f   :  { %s652_s14 = spop %651 }
 0x690   :  { %v581_v17 = vstv %s652_s14 }
 0x691   :  { %v582_v18 = vmul.f32 %v581_v17, %v565_v3 }
 0x693   :  { %584 = vrot.lane.b32.xlu2 %v582_v18, %s759_s15 }
 0x6ed   :  { %v585_v19 = vpop.permute.xlu2 %584 }
 0x6ee   :  { %v587_v20 = vsub.f32 %v539_v47, %v585_v19 }
 0x6f0   :  { %v588_v21 = vmul.f32 %v587_v20, %v587_v20 }
 0x6f2   :  { %590 = vrot.lane.b32.xlu2 %v588_v21, %s758_s0 }
 0x74c   :  { %v591_v16 = vpop.permute.xlu2 %590 }
 0x74d   :  { %v593_v22 = vsel %vm542_vm2, %v591_v16, 0.0 }
 0x74e   :  { %594 = vadd.xlane.f32.xlu2 %v593_v22 }
 0x7c1   :  { %v595_v23 = vpop.xlane.xlu2 %594 }
 0x7c2   :  { %v596_v24 = vrot.slane %v595_v23, 4 }
 0x7c4   :  { %v597_v25 = vadd.f32 %v596_v24, %v595_v23 }
 0x7c6   :  { %v598_v15 = vrot.slane %v597_v25, 2 }
 0x7c8   :  { %v599_v26 = vadd.f32 %v598_v15, %v597_v25 }
 0x7ca   :  { %v600_v27 = vrot.slane %v599_v26, 1 }
 0x7cc   :  { %v601_v28 = vadd.f32 %v600_v27, %v599_v26 }
 0x7ce   :  { %653 = vpush %v601_v28 }
 0x7ff   :  { %s654_s16 = spop %653 }
 0x800   :  { %v603_v29 = vstv %s654_s16 }
 0x801   :  { %v604_v30 = vadd.f32 1e-12, %v603_v29 }
 0x803   :  { %719 = vrsqrt.f32 %v604_v30  ;;  %vm611_vm7 = vweird.f32 %v604_v30 }
 0x809   :  { %v720_v31 = vpop.eup %719 }
 0x80a   :  { %v606_v32 = vmul.f32 %v720_v31, %v604_v30  ;;  %vm612_vm6 = vweird.f32 %v720_v31 }
 0x80b   :  { %vm613_vm8 = vmor %vm611_vm7, %vm612_vm6 }
 0x80c   :  { %v607_v33 = vmul.f32 %v720_v31, %v606_v32 }
 0x80e   :  { %v608_v34 = vmul.f32 0.5, %v607_v33 }
 0x810   :  { %v609_v35 = vsub.f32 1.5, %v608_v34 }
 0x812   :  { %v610_v36 = vmul.f32 %v720_v31, %v609_v35 }
 0x814   :  { %v614_v14 = vsel %vm613_vm8, %v720_v31, %v610_v36 }
 0x815   :  { %v615_v37 = vmul.f32 %v614_v14, %v587_v20 }
 0x817   :  { %626 = vperm.xlu0 %693, %v615_v37  }
 0x889   :  { %v627_v40 = vpop.permute.xlu0 %626 }
 0x88a   :  { %v629_v41 = vsel %vm618_vm9, %v622_v4, %v627_v40 }
 0x88b   :  { %631 = vst.msk [vmem:[%s824_s1] sm:$0xff] %vm630_vm10, %v629_v41 }
 0x88c   :  { %636 = vsyncpa [#allocation3], 1 }

</bundles_post_ra>
